<compile_context>
chip_gen: v5e
topology: v5e:2x2
jax: 0.10.0
libtpu: 0.0.40
codegen_flags: <defaults>
</compile_context>

<pallas_src>
import functools

import jax
import jax.numpy as jnp
from jax import lax
from jax.experimental import pallas as pl
from jax.experimental.pallas import tpu as pltpu

# Safe on v5e/v6e (128 MiB physical) and v7x (64 MiB physical, 32 MiB scoped
# default).  Per the review: do not raise past ~48-56 MiB on v7x.
_VMEM_LIMIT = 32 * 1024 * 1024


def _round_up(x, m):
    return ((x + m - 1) // m) * m


def _pick_tile(size, target, multiple):
    """Largest tile <= target that is a multiple of `multiple` and divides `size`.

    Falls back to the full extent (always a legal TPU block shape).  Used for
    the K / Nout axes, which are model dims (typically multiples of 128)."""
    if size <= target:
        return size
    t = (target // multiple) * multiple
    while t >= multiple:
        if size % t == 0:
            return t
        t -= multiple
    return size


# ----------------------------------------------------------------------------
# Tiled projection kernels (grid + f32 accumulator + pl.when init/finalize)
# ----------------------------------------------------------------------------
def _matmul_kernel(x_ref, w_ref, o_ref, acc_ref):
    # x: (tm, tk), w: (tk, tn) -> o: (tm, tn); K reduced over innermost grid axis.
    @pl.when(pl.program_id(2) == 0)
    def _():
        acc_ref[...] = jnp.zeros_like(acc_ref)

    acc_ref[...] += jnp.dot(x_ref[...], w_ref[...],
                            preferred_element_type=jnp.float32)

    @pl.when(pl.program_id(2) == pl.num_programs(2) - 1)
    def _():
        o_ref[...] = acc_ref[...].astype(o_ref.dtype)


def _matmul_bias_kernel(x_ref, w_ref, b_ref, o_ref, acc_ref):
    @pl.when(pl.program_id(2) == 0)
    def _():
        acc_ref[...] = jnp.zeros_like(acc_ref)

    acc_ref[...] += jnp.dot(x_ref[...], w_ref[...],
                            preferred_element_type=jnp.float32)

    @pl.when(pl.program_id(2) == pl.num_programs(2) - 1)
    def _():
        o_ref[...] = (acc_ref[...]
                      + b_ref[...].astype(jnp.float32)).astype(o_ref.dtype)


def _linear(x2, w, b=None, *, out_dtype=None, compute_dtype=jnp.bfloat16,
            tm_target=256, tn_target=512, tk_target=512):
    """y = x2 @ w (+ b) with a tiled Pallas matmul.  x2: (M, K), w: (K, Nout).

    Operands are cast to `compute_dtype` (bf16 by default) for the MXU;
    accumulation stays f32.  M is zero-padded to a multiple of the row tile so
    awkward token counts keep large tiles (padded rows are sliced off)."""
    M, K = x2.shape
    K2, Nout = w.shape
    assert K == K2, (x2.shape, w.shape)
    if out_dtype is None:
        out_dtype = x2.dtype

    xc = x2.astype(compute_dtype)
    wc = w.astype(compute_dtype)

    # Row tile: keep it large; pad M so it divides evenly (avoids thousands of
    # tiny grid steps that re-fetch the weight tile per M-tile).
    tm = min(tm_target, _round_up(M, 8))
    m_pad = _round_up(M, tm)
    if m_pad != M:
        xc = jnp.pad(xc, ((0, m_pad - M), (0, 0)))

    tn = _pick_tile(Nout, tn_target, 128)   # lane-aligned (or full-extent)
    tk = _pick_tile(K, tk_target, 128)

    grid = (m_pad // tm, Nout // tn, K // tk)   # reduction axis innermost

    in_specs = [
        pl.BlockSpec((tm, tk), lambda i, j, k: (i, k)),
        pl.BlockSpec((tk, tn), lambda i, j, k: (k, j)),
    ]
    args = [xc, wc]
    if b is None:
        kernel = _matmul_kernel
    else:
        kernel = _matmul_bias_kernel
        in_specs.append(pl.BlockSpec((1, tn), lambda i, j, k: (0, j)))
        args.append(b)

    out = pl.pallas_call(
        kernel,
        out_shape=jax.ShapeDtypeStruct((m_pad, Nout), out_dtype),
        grid_spec=pltpu.PrefetchScalarGridSpec(
            num_scalar_prefetch=0,
            grid=grid,
            in_specs=in_specs,
            out_specs=pl.BlockSpec((tm, tn), lambda i, j, k: (i, j)),
            scratch_shapes=[pltpu.VMEM((tm, tn), jnp.float32)],
        ),
        compiler_params=pltpu.CompilerParams(
            dimension_semantics=("parallel", "parallel", "arbitrary"),
            vmem_limit_bytes=_VMEM_LIMIT,
        ),
    )(*args)
    return out[:M] if m_pad != M else out


# ----------------------------------------------------------------------------
# Attention kernel: one grid step per batch element, all heads processed inside.
# Input block : (N, 3C)  lane-dense (columns ordered q|k|v, each (H, D)-major).
# Output block: (N, C)   lane-dense; written with a single full-width store.
# ----------------------------------------------------------------------------
def _attention_kernel(qkv_ref, o_ref, acc_ref, *, num_heads, head_dim, scale):
    C = num_heads * head_dim

    # Static per-head column slices (zero-cost ref views; offsets are Python
    # ints, so no dynamic lane-dimension indexing is required).  Each head's
    # (N, N) scores are consumed and its result written into the f32 scratch
    # before the next head starts, keeping live ranges bounded.
    for h in range(num_heads):
        q0 = h * head_dim
        q = qkv_ref[:, q0:q0 + head_dim] * scale              # (N, D), scale folded into q
        k = qkv_ref[:, C + q0:C + q0 + head_dim]               # (N, D)
        v = qkv_ref[:, 2 * C + q0:2 * C + q0 + head_dim]       # (N, D)

        # q @ k^T without materializing k.T: contract the D axis of both sides.
        # (Per review: if MLIR shows a hidden VMEM transpose copy here, switch
        # to an explicit XLU transpose of k -- the XLU slot is free in this
        # kernel.)
        s = lax.dot_general(q, k,
                            dimension_numbers=(((1,), (1,)), ((), ())),
                            preferred_element_type=jnp.float32)      # (N, N) f32

        m = jnp.max(s, axis=-1, keepdims=True)
        p = jnp.exp(s - m)                                           # unnormalized probs
        denom = jnp.sum(p, axis=-1, keepdims=True)

        o_h = jnp.dot(p.astype(v.dtype), v,
                      preferred_element_type=jnp.float32)            # (N, D) f32

        # Normalize AFTER the PV matmul: N*D elements instead of N*N, so the
        # exact (approx=False) reciprocal costs essentially nothing.
        o_h = o_h * pl.reciprocal(denom, approx=False)

        acc_ref[:, q0:q0 + head_dim] = o_h

    # Every column of the scratch was written above; one lane-dense store.
    o_ref[...] = acc_ref[...].astype(o_ref.dtype)


# ----------------------------------------------------------------------------
# Forward pass
# ----------------------------------------------------------------------------
def attention_forward(x, w_qkv, w_proj, b_proj, num_heads, *,
                      compute_dtype=jnp.bfloat16):
    """Forward pass equivalent to the PyTorch Attention module (eval mode)."""
    B, N, C = x.shape
    assert C % num_heads == 0, (C, num_heads)
    D = C // num_heads
    scale = float(D) ** -0.5

    b_proj = jnp.asarray(b_proj).reshape(1, C)   # accept (C,) or (1, C)

    x2 = x.reshape(B * N, C)

    # --- qkv = self.qkv(x)  (Linear, no bias): tiled bf16 matmul --------------
    # Output columns are ordered (3, H, D); kept lane-dense as (B, N, 3C).
    qkv = _linear(x2, w_qkv, out_dtype=compute_dtype, compute_dtype=compute_dtype)
    qkv3 = qkv.reshape(B, N, 3 * C)              # free metadata reshape

    # --- per-batch multi-head attention ---------------------------------------
    # NOTE (v7x): with B >= 2 the batch grid already covers both TensorCores;
    # for B == 1 a (B, H) grid would balance the cores better.
    attn_out = pl.pallas_call(
        functools.partial(_attention_kernel, num_heads=num_heads,
                          head_dim=D, scale=scale),
        out_shape=jax.ShapeDtypeStruct((B, N, C), compute_dtype),
        grid=(B,),
        in_specs=[
            pl.BlockSpec((None, N, 3 * C), lambda b: (b, 0, 0)),
        ],
        out_specs=pl.BlockSpec((None, N, C), lambda b: (b, 0, 0)),
        scratch_shapes=[pltpu.VMEM((N, C), jnp.float32)],
        compiler_params=pltpu.CompilerParams(
            dimension_semantics=("parallel",),
            vmem_limit_bytes=_VMEM_LIMIT,
        ),
    )(qkv3)

    # Output is already token-major (B, N, C): free reshape, no HBM transpose.
    attn2 = attn_out.reshape(B * N, C)

    # --- x = self.proj(x)  (Linear with bias): tiled bf16 matmul --------------
    out = _linear(attn2, w_proj, b_proj, out_dtype=x.dtype,
                  compute_dtype=compute_dtype)
    return out.reshape(B, N, C)


# Pure-JAX reference (f32) for correctness checking.
def attention_ref(x, w_qkv, w_proj, b_proj, num_heads):
    B, N, C = x.shape
    D = C // num_heads
    scale = D ** -0.5
    qkv = (x @ w_qkv).reshape(B, N, 3, num_heads, D).transpose(2, 0, 3, 1, 4)
    q, k, v = qkv[0], qkv[1], qkv[2]
    attn = jnp.einsum("bhnd,bhmd->bhnm", q, k) * scale
    attn = jax.nn.softmax(attn, axis=-1)
    o = jnp.einsum("bhnm,bhmd->bhnd", attn, v)
    o = o.transpose(0, 2, 1, 3).reshape(B, N, C)
    return o @ w_proj + jnp.asarray(b_proj).reshape(1, C)


if __name__ == "__main__":
    B, N, C, H = 2, 16, 64, 4  # batch, tokens, dim, num_heads (head_dim = 16)

    key = jax.random.PRNGKey(0)
    kx, kqkv, kproj, kb = jax.random.split(key, 4)

    x = jax.random.normal(kx, (B, N, C), dtype=jnp.float32)
    # nn.Linear(dim, dim*3, bias=False): torch weight (3C, C); stored transposed.
    w_qkv = jax.random.normal(kqkv, (C, 3 * C), dtype=jnp.float32) * 0.02
    # nn.Linear(dim, dim): weight (C, C) + bias (C,); bias kept 2D for the kernel.
    w_proj = jax.random.normal(kproj, (C, C), dtype=jnp.float32) * 0.02
    b_proj = jax.random.normal(kb, (1, C), dtype=jnp.float32) * 0.02

    out = attention_forward(x, w_qkv, w_proj, b_proj, H)
    out = jax.block_until_ready(out)

    ref = attention_ref(x, w_qkv, w_proj, b_proj, H)
    assert out.shape == (B, N, C)
    max_err = jnp.max(jnp.abs(out - ref))
    # Tolerance accounts for bf16 matmul operands (accumulation stays f32).
    assert jnp.allclose(out, ref, atol=2e-2, rtol=2e-2), (
        f"mismatch vs reference (max abs err={max_err})")

    print("KERNEL_OK")
</pallas_src>

<mosaic_0001>
module attributes {stable_mosaic.version = 11 : i64} {
  func.func @_matmul_kernel(%arg0: i32, %arg1: i32, %arg2: i32, %arg3: memref<32x64xbf16, #tpu.memory_space<vmem>>, %arg4: memref<64x192xbf16, #tpu.memory_space<vmem>>, %arg5: memref<32x192xbf16, #tpu.memory_space<vmem>>, %arg6: memref<32x192xf32, #tpu.memory_space<vmem>>) attributes {dimension_semantics = [#tpu.dimension_semantics<parallel>, #tpu.dimension_semantics<parallel>, #tpu.dimension_semantics<arbitrary>], iteration_bounds = array<i64: 1, 1, 1>, scalar_prefetch = 0 : i64, scratch_operands = 1 : i64, tpu.core_type = #tpu.core_type<tc>, window_params = [{transform_indices = @transform_0, window_bounds = array<i64: 32, 64>}, {transform_indices = @transform_1, window_bounds = array<i64: 64, 192>}, {transform_indices = @transform_2, window_bounds = array<i64: 32, 192>}]} {
    %c0_i32 = arith.constant 0 : i32
    %0 = arith.cmpi eq, %arg2, %c0_i32 : i32
    %1 = arith.extui %0 : i1 to i32
    %c0_i32_0 = arith.constant 0 : i32
    %2 = arith.cmpi ne, %1, %c0_i32_0 : i32
    scf.if %2 {
      %cst_10 = arith.constant 0.000000e+00 : f32
      %12 = vector.broadcast %cst_10 : f32 to vector<32x192xf32>
      %c0_11 = arith.constant 0 : index
      %c0_12 = arith.constant 0 : index
      %13 = vector.load %arg6[%c0_11, %c0_12] : memref<32x192xf32, #tpu.memory_space<vmem>>, vector<32x192xf32>
      tpu.vector_store %arg6[%c0_11, %c0_12], %12 {strides = array<i32>} : memref<32x192xf32, #tpu.memory_space<vmem>>, vector<32x192xf32>,
    } else {
    }
    %c0 = arith.constant 0 : index
    %c0_1 = arith.constant 0 : index
    %3 = vector.load %arg6[%c0, %c0_1] : memref<32x192xf32, #tpu.memory_space<vmem>>, vector<32x192xf32>
    %c0_2 = arith.constant 0 : index
    %c0_3 = arith.constant 0 : index
    %4 = vector.load %arg3[%c0_2, %c0_3] : memref<32x64xbf16, #tpu.memory_space<vmem>>, vector<32x64xbf16>
    %c0_4 = arith.constant 0 : index
    %c0_5 = arith.constant 0 : index
    %5 = vector.load %arg4[%c0_4, %c0_5] : memref<64x192xbf16, #tpu.memory_space<vmem>>, vector<64x192xbf16>
    %cst = arith.constant dense<0.000000e+00> : vector<32x192xf32>
    %6 = tpu.matmul %4, %5, %cst {dimension_numbers = #tpu.dot_dimension_numbers<[1], [0], [0], [1], [0, 0, 1, 1], [], []>} : vector<32x64xbf16>, vector<64x192xbf16>, vector<32x192xf32> -> vector<32x192xf32>
    %7 = arith.addf %3, %6 : vector<32x192xf32>
    %c0_6 = arith.constant 0 : index
    %c0_7 = arith.constant 0 : index
    %8 = vector.load %arg6[%c0_6, %c0_7] : memref<32x192xf32, #tpu.memory_space<vmem>>, vector<32x192xf32>
    tpu.vector_store %arg6[%c0_6, %c0_7], %7 {strides = array<i32>} : memref<32x192xf32, #tpu.memory_space<vmem>>, vector<32x192xf32>,
    %c0_i32_8 = arith.constant 0 : i32
    %9 = arith.cmpi eq, %arg2, %c0_i32_8 : i32
    %10 = arith.extui %9 : i1 to i32
    %c0_i32_9 = arith.constant 0 : i32
    %11 = arith.cmpi ne, %10, %c0_i32_9 : i32
    scf.if %11 {
      %c0_10 = arith.constant 0 : index
      %c0_11 = arith.constant 0 : index
      %12 = vector.load %arg6[%c0_10, %c0_11] : memref<32x192xf32, #tpu.memory_space<vmem>>, vector<32x192xf32>
      %13 = arith.truncf %12 : vector<32x192xf32> to vector<32x192xbf16>
      %c0_12 = arith.constant 0 : index
      %c0_13 = arith.constant 0 : index
      %14 = vector.load %arg5[%c0_12, %c0_13] : memref<32x192xbf16, #tpu.memory_space<vmem>>, vector<32x192xbf16>
      tpu.vector_store %arg5[%c0_12, %c0_13], %13 {strides = array<i32>} : memref<32x192xbf16, #tpu.memory_space<vmem>>, vector<32x192xbf16>,
    } else {
    }
    return
  }
  func.func @transform_0(%arg0: i32, %arg1: i32, %arg2: i32) -> (i32, i32) {
    %c0_i32 = arith.constant 0 : i32
    return %arg0, %arg2 : i32, i32
  }
  func.func @transform_1(%arg0: i32, %arg1: i32, %arg2: i32) -> (i32, i32) {
    %c0_i32 = arith.constant 0 : i32
    return %arg2, %arg1 : i32, i32
  }
  func.func @transform_2(%arg0: i32, %arg1: i32, %arg2: i32) -> (i32, i32) {
    %c0_i32 = arith.constant 0 : i32
    return %arg0, %arg1 : i32, i32
  }
}

</mosaic_0001>

<bundles_post_ra>
// kernel: tpu_custom_call.1
= control target key start
LH: loop header
LB: loop body
LE: loop exit
PB: predicated region body
PF: predicated region fallthrough
CT: control target
= control target key end

     0   :  { %7 = vsyncpa [#allocation4], 0  ;;  %s441_s0 = inlined_call_operand.hbm [shape: bf16[32,64], index: 0, kind: input, shape index: {}]   ;;  %s442_s1 = inlined_call_operand.hbm [shape: bf16[64,192], index: 1, kind: input, shape index: {}]   ;;  %s443_s2 = inlined_call_operand.hbm [shape: bf16[32,192], index: 2, kind: output, shape index: {}]  }
   0x1   :  { %8 = vsyncpa [#allocation7], 0 }
   0x2   :  { %9 = vsyncpa [#allocation5], 0  ;;  %s14_s11 = sshll.u32 %s441_s0, 4  ;;  %s379_s12 = smov [#allocation3]   ;;  %s15_s11 = int_to_ptr.hbm [resolvable:$true] %s14_s11 }
   0x3   :  { %s16_s13 = sshll.u32 %s379_s12, 4  ;;  %s27_s16 = sshll.u32 %s442_s1, 4  ;;  %s17_s13 = int_to_ptr.vmem [resolvable:$true] %s16_s13  ;;  %s28_s16 = int_to_ptr.hbm [resolvable:$true] %s27_s16 }
   0x4   :  { %s380_s17 = smov 64   ;;  %s381_s18 = smov 4  }
   0x5   :  { %22 = dma.hbm_to_vmem [thread:$0]  %s15_s11, 256, %s17_s13, [#allocation4], %s380_s17, %s380_s17, %s381_s18  }
   0x6   :  { %s382_s19 = smov [#allocation6]   ;;  %s383_s21 = smov 128  }
   0x7   :  { %s29_s20 = sshll.u32 %s382_s19, 4  ;;  %s384_s22 = smov 8   ;;  %s30_s20 = int_to_ptr.vmem [resolvable:$true] %s29_s20 }
   0x8   :  { %35 = dma.hbm_to_vmem [thread:$0]  %s28_s16, 1024, %s30_s20, [#allocation7], %s383_s21, %s383_s21, %s384_s22  }
   0x9   :  { %373 = dma.done.wait [#allocation4], 256  }
   0xa   :  { %374 = vsyncadd [#allocation4], 4294967040 }
   0xb   :  { %375 = dma.done.wait [#allocation7], 1024  }
   0xc   :  { %376 = vsyncadd [#allocation7], 4294966272  ;;  %vm50_vm0 = vcmask 523264   ;;  %v385_v0 = vmov 0.0   ;;  %v265_v1 = vld [vmem:[#allocation6 + $0x30] sm:$0xf] }
   0xd   :  { %51 = vst.msk [vmem:[#allocation2 + $0x8] sm:$0xff] %vm50_vm0, %v385_v0  ;;  %v284_v2 = vld [vmem:[#allocation6 + $0x34] sm:$0xf0]  ;;  %v283_v3 = vld [vmem:[#allocation6 + $0x34] sm:$0xf]  ;;  %vm204_vm1 = vcmask 1043456  }
   0xe   :  { %53 = vst.msk [vmem:[#allocation2 + $0x18] sm:$0xff] %vm50_vm0, %v385_v0  ;;  %v266_v4 = vor.u32 %v284_v2, %v265_v1  ;;  %v267_v5 = vld [vmem:[#allocation6 + $0x38] sm:$0xf0]  ;;  %v257_v6 = vld [vmem:[#allocation6 + $0x20] sm:$0xf]  ;;  %v275_v26 = vld [vmem:[#allocation3] sm:$0xff] }
   0xf   :  { %55 = vst.msk [vmem:[#allocation2 + $0x28] sm:$0xff] %vm50_vm0, %v385_v0  ;;  %v282_v7 = vld [vmem:[#allocation6 + $0x24] sm:$0xf0]  ;;  %v270_v8 = vor.u32 %v283_v3, %v267_v5  ;;  %v281_v9 = vld [vmem:[#allocation6 + $0x24] sm:$0xf]  ;;  %v276_v25 = vld [vmem:[#allocation3 + $0x8] sm:$0xff] }
  0x10   :  { %57 = vst.msk [vmem:[#allocation2 + $0x38] sm:$0xff] %vm50_vm0, %v385_v0  ;;  %v259_v10 = vld [vmem:[#allocation6 + $0x28] sm:$0xf0]  ;;  %139 = vmatpush.bf16.msra.mxu0 %v266_v4  ;;  %285 = vmatpush.bf16.msra.mxu2 %v266_v4  ;;  %v258_v11 = vor.u32 %v282_v7, %v257_v6  ;;  %v249_v13 = vld [vmem:[#allocation6 + $0x10] sm:$0xf]  ;;  %vm205_vm2 = vcmask 523268  }
  0x11   :  { %158 = vmatpush.bf16.msra.mxu1 %v270_v8  ;;  %289 = vmatpush.bf16.msra.mxu3 %v270_v8  ;;  %v262_v12 = vor.u32 %v281_v9, %v259_v10  ;;  %v280_v14 = vld [vmem:[#allocation6 + $0x14] sm:$0xf0]  ;;  %v279_v15 = vld [vmem:[#allocation6 + $0x14] sm:$0xf]  ;;  %v251_v16 = vld [vmem:[#allocation6 + $0x18] sm:$0xf0] }
  0x12   :  { %v250_v17 = vor.u32 %v280_v14, %v249_v13  ;;  %v254_v18 = vor.u32 %v279_v15, %v251_v16  ;;  %v241_v19 = vld [vmem:[#allocation6] sm:$0xf]  ;;  %v278_v20 = vld [vmem:[#allocation6 + $0x4] sm:$0xf0]  ;;  %v277_v21 = vld [vmem:[#allocation6 + $0x4] sm:$0xf] }
  0x13   :  { %v243_v22 = vld [vmem:[#allocation6 + $0x8] sm:$0xf0]  ;;  %v242_v23 = vor.u32 %v278_v20, %v241_v19  ;;  %vm421_vm3 = vmor %vm205_vm2, %vm204_vm1  ;;  %s386_s0 = smov [#allocation8]   ;;  %s217_s25 = sshll.u32 %s443_s2, 4  ;;  %s218_s25 = int_to_ptr.hbm [resolvable:$true] %s217_s25 }
  0x14   :  { %140 = vmatpush.bf16.msra.mxu0 %v258_v11  ;;  %286 = vmatpush.bf16.msra.mxu2 %v258_v11  ;;  %v246_v24 = vor.u32 %v277_v21, %v243_v22  ;;  %v59_v27 = vld [vmem:[#allocation2 + $0x8] sm:$0xff]  ;;  %s215_s1 = sshll.u32 %s386_s0, 4  ;;  %s216_s1 = int_to_ptr.vmem [resolvable:$true] %s215_s1 }
  0x15   :  { %159 = vmatpush.bf16.msra.mxu1 %v262_v12  ;;  %290 = vmatpush.bf16.msra.mxu3 %v262_v12  ;;  %v61_v34 = vld [vmem:[#allocation2 + $0x18] sm:$0xff] }
  0x16   :  { %v63_v31 = vld [vmem:[#allocation2 + $0x28] sm:$0xff] }
  0x17   :  { %v65_v42 = vld [vmem:[#allocation2 + $0x38] sm:$0xff] }
  0x18   :  { %141 = vmatpush.bf16.msra.mxu0 %v250_v17  ;;  %287 = vmatpush.bf16.msra.mxu2 %v250_v17 }
  0x19   :  { %160 = vmatpush.bf16.msra.mxu1 %v254_v18  ;;  %291 = vmatpush.bf16.msra.mxu3 %v254_v18 }
  0x1c   :  { %142 = vmatpush.bf16.msra.mxu0 %v242_v23  ;;  %288 = vmatpush.bf16.msra.mxu2 %v242_v23 }
  0x1d   :  { %161 = vmatpush.bf16.msra.mxu1 %v246_v24  ;;  %292 = vmatpush.bf16.msra.mxu3 %v246_v24 }
  0x1f   :  { %271 = vmatmul.msk.bf16.vlgmr.msra.gmra.mxu0 %vm50_vm0, %v275_v26  ;;  %272 = vmatmul.msk.bf16.vlgmr.msra.gmra.mxu2 %vm50_vm0, %v276_v25 }
  0x20   :  { %273 = vmatmul.msk.bf16.vlgmr.msra.gmra.mxu1 %vm50_vm0, %v275_v26  ;;  %274 = vmatmul.msk.bf16.vlgmr.msra.gmra.mxu3 %vm50_vm0, %v276_v25 }
  0x9c   :  { %v144_v28 = vpop.f32.mrf.mxu0 }
  0x9d   :  { %v163_v29 = vpop.f32.mrf.mxu1 }
  0x9e   :  { %v174_v30 = vadd.f32 %v163_v29, %v59_v27 }
  0xa0   :  { %182 = vst.msk [vmem:[#allocation2 + $0x8] sm:$0xff] %vm50_vm0, %v174_v30 }
  0xa2   :  { %v149_v32 = vpop.f32.mrf.mxu2 }
  0xa3   :  { %v168_v33 = vpop.f32.mrf.mxu3 }
  0xa4   :  { %v178_v35 = vadd.f32 %v168_v33, %v63_v31  ;;  %v146_v36 = vpop.f32.mrf.mxu0 }
  0xa5   :  { %v165_v37 = vpop.f32.mrf.mxu1 }
  0xa6   :  { %186 = vst.msk [vmem:[#allocation2 + $0x28] sm:$0xff] %vm50_vm0, %v178_v35  ;;  %v176_v38 = vadd.f32 %v165_v37, %v61_v34 }
  0xa7   :  { %v193_v39 = vld [vmem:[#allocation2 + $0x8] sm:$0xff] }
  0xa8   :  { %184 = vst.msk [vmem:[#allocation2 + $0x18] sm:$0xff] %vm50_vm0, %v176_v38  ;;  %v200_v41 = vpack.c.bf16 %v193_v39, %v144_v28 }
  0xaa   :  { %v151_v43 = vpop.f32.mrf.mxu2  ;;  %207 = vst.msk [vmem:[#allocation8] sm:$0xff] %vm421_vm3, %v200_v41 }
  0xab   :  { %v170_v44 = vpop.f32.mrf.mxu3 }
  0xac   :  { %v180_v45 = vadd.f32 %v170_v44, %v65_v42 }
  0xad   :  { %v197_v46 = vld [vmem:[#allocation2 + $0x28] sm:$0xff] }
  0xae   :  { %188 = vst.msk [vmem:[#allocation2 + $0x38] sm:$0xff] %vm50_vm0, %v180_v45  ;;  %v202_v47 = vpack.c.bf16 %v197_v46, %v149_v32 }
  0xaf   :  { %v195_v48 = vld [vmem:[#allocation2 + $0x18] sm:$0xff] }
  0xb0   :  { %v201_v49 = vpack.c.bf16 %v195_v48, %v146_v36  ;;  %209 = vst.msk [vmem:[#allocation8 + $0x10] sm:$0xff] %vm421_vm3, %v202_v47 }
  0xb2   :  { %208 = vst.msk [vmem:[#allocation8 + $0x8] sm:$0xff] %vm421_vm3, %v201_v49 }
  0xb5   :  { %v199_v50 = vld [vmem:[#allocation2 + $0x38] sm:$0xff] }
  0xb6   :  { %v203_v51 = vpack.c.bf16 %v199_v50, %v151_v43 }
  0xb8   :  { %210 = vst.msk [vmem:[#allocation8 + $0x18] sm:$0xff] %vm421_vm3, %v203_v51 }
  0xb9   :  { %223 = dma.vmem_to_hbm [thread:$0]  %s216_s1, 512, %s218_s25, [#allocation5], %s383_s21, %s383_s21, %s384_s22  }
  0xba   :  { %377 = dma.done.wait [#allocation5], 512  }
  0xbb   :  { %378 = vsyncadd [#allocation5], 4294966784 }
  0xbc   :  { %228 = vsyncpa [#allocation4], 1 }
  0xbd   :  { %229 = vsyncpa [#allocation7], 1 }
  0xbe   :  { %230 = vsyncpa [#allocation5], 1 }

</bundles_post_ra>
